<compile_context>
chip_gen: v6e
topology: v6e:2x2x1
jax: 0.10.0
libtpu: 0.0.40
codegen_flags: <defaults>
</compile_context>

<pallas_src>
import jax
import jax.numpy as jnp
from jax.experimental import pallas as pl
from jax.experimental.pallas import tpu as pltpu

C1, C2, K = 16, 32, 3   # conv1 out-channels, conv2 out-channels, kernel size
KP = 8                  # conv1 tap dim zero-padded to a sublane-friendly 8


def cnn_kernel(xcol_ref, w1_ref, b1_ref, w2_ref, b2_ref, wfc_ref, bfc_ref,
               o_ref, h1p_ref):
    # xcol_ref: (TB*L, KP)     im2col'd input, tap-major, zero-padded to KP
    # w1_ref  : (KP, C1)       w1[k, c]       = conv1.weight[c, 0, k]
    # b1_ref  : (1, C1)
    # w2_ref  : (K*C1, C2)     w2[k*C1+i, o]  = conv2.weight[o, i, k]
    # b2_ref  : (1, C2)
    # wfc_ref : (C2, NCP)      fc weight, lane-padded to NCP (multiple of 128)
    # bfc_ref : (1, NCP)
    # o_ref   : (TB, NCP)
    # h1p_ref : (TB, L+2, C1)  VMEM scratch: zero-padded conv1 activations
    TB, Lp2, _ = h1p_ref.shape
    L = Lp2 - 2

    # ---- conv1 (1 -> 16, k=3, pad=1): one MXU matmul + bias + ReLU ----
    h1 = jnp.dot(xcol_ref[...], w1_ref[...],
                 preferred_element_type=jnp.float32)           # (TB*L, C1)
    h1 = jnp.maximum(h1 + b1_ref[...], 0.0)

    # Write into the zero-padded channels-last scratch: conv2 taps are then
    # plain slices (no concatenate copies of the activations).
    h1p_ref[:, 1:L + 1, :] = h1.reshape(TB, L, C1)
    h1p_ref[:, 0:1, :] = jnp.zeros((TB, 1, C1), jnp.float32)
    h1p_ref[:, L + 1:L + 2, :] = jnp.zeros((TB, 1, C1), jnp.float32)
    h1p = h1p_ref[...]

    # ---- conv2 (16 -> 32, k=3, pad=1): fused im2col -> single K=48 matmul ----
    im2 = jnp.concatenate(
        [h1p[:, 0:L, :], h1p[:, 1:L + 1, :], h1p[:, 2:L + 2, :]], axis=-1)
    h2 = jnp.dot(im2.reshape(TB * L, K * C1), w2_ref[...],
                 preferred_element_type=jnp.float32)           # (TB*L, C2)
    h2 = jnp.maximum(h2 + b2_ref[...], 0.0)

    # ---- AdaptiveMaxPool1d(1): global max over length ----
    pooled = jnp.max(h2.reshape(TB, L, C2), axis=1)            # (TB, C2)

    # ---- dropout: identity at inference ----
    # TODO(synk): training-mode dropout masking not implemented (eval semantics).

    # ---- fc: lane-padded (128-wide) output block, full unmasked store ----
    o_ref[...] = jnp.dot(pooled, wfc_ref[...],
                         preferred_element_type=jnp.float32) + bfc_ref[...]


def cnn_forward(x, params, tb=8):
    """x: (B, 1, L) float32 (PyTorch NCL layout)."""
    w1t, b1, w2t, b2, wfcT, bfc = params
    B, cin, L = x.shape
    assert cin == 1
    NC = bfc.shape[-1]
    NCP = ((NC + 127) // 128) * 128           # lane-pad FC output to 128
    TB = min(tb, B)                           # batch tile (sized for VMEM)
    Bp = pl.cdiv(B, TB) * TB

    # ---- host-side prep (layout plumbing, not compute-hoisting) ----
    xpad = jnp.pad(x[:, 0, :], ((0, Bp - B), (1, 1)))                  # (Bp, L+2)
    xcol = jnp.stack([xpad[:, k:k + L] for k in range(K)], axis=-1)    # (Bp, L, K)
    xcol = jnp.pad(xcol, ((0, 0), (0, 0), (0, KP - K))).reshape(Bp * L, KP)
    w1p = jnp.pad(w1t, ((0, KP - K), (0, 0)))                          # (KP, C1)
    w2s = w2t.reshape(K * C1, C2)                                      # (48, C2)
    wfc_p = jnp.pad(wfcT, ((0, 0), (0, NCP - NC)))                     # (C2, NCP)
    bfc_p = jnp.pad(bfc, ((0, 0), (0, NCP - NC)))                      # (1, NCP)

    out = pl.pallas_call(
        cnn_kernel,
        out_shape=jax.ShapeDtypeStruct((Bp, NCP), jnp.float32),
        grid=(Bp // TB,),
        in_specs=[
            pl.BlockSpec((TB * L, KP), lambda i: (i, 0)),   # im2col'd input tile
            pl.BlockSpec((KP, C1), lambda i: (0, 0)),
            pl.BlockSpec((1, C1), lambda i: (0, 0)),
            pl.BlockSpec((K * C1, C2), lambda i: (0, 0)),
            pl.BlockSpec((1, C2), lambda i: (0, 0)),
            pl.BlockSpec((C2, NCP), lambda i: (0, 0)),
            pl.BlockSpec((1, NCP), lambda i: (0, 0)),
        ],
        out_specs=pl.BlockSpec((TB, NCP), lambda i: (i, 0)),
        scratch_shapes=[pltpu.VMEM((TB, L + 2, C1), jnp.float32)],
        compiler_params=pltpu.CompilerParams(
            dimension_semantics=("parallel",),      # shard batch tiles over TCs
            vmem_limit_bytes=32 * 1024 * 1024,
        ),
    )(xcol, w1p, b1, w2s, b2, wfc_p, bfc_p)
    return out[:B, :NC]


def ref_forward(x, params):
    """Pure-JAX reference matching the PyTorch forward (eval mode)."""
    w1t, b1, w2t, b2, wfcT, bfc = params
    w1_oik = jnp.transpose(w1t, (1, 0)).reshape(C1, 1, K)    # (O, I, K)
    w2_oik = jnp.transpose(w2t, (2, 1, 0))                   # (O, I, K)
    dn = ('NCH', 'OIH', 'NCH')
    h1 = jax.lax.conv_general_dilated(x, w1_oik, (1,), [(1, 1)],
                                      dimension_numbers=dn)
    h1 = jnp.maximum(h1 + b1.reshape(1, C1, 1), 0.0)
    h2 = jax.lax.conv_general_dilated(h1, w2_oik, (1,), [(1, 1)],
                                      dimension_numbers=dn)
    h2 = jnp.maximum(h2 + b2.reshape(1, C2, 1), 0.0)
    pooled = jnp.max(h2, axis=-1)
    return pooled @ wfcT + bfc


if __name__ == "__main__":
    B, L, NC = 2, 16, 4        # batch, num_features (sequence length), num_classes

    key = jax.random.PRNGKey(0)
    ks = jax.random.split(key, 7)
    # Deterministic synthetic parameters (shapes from CNN.__init__):
    #   conv1.weight (16,1,3) -> w1t (3,16);  conv2.weight (32,16,3) -> w2t (3,16,32)
    #   fc.weight (NC,32) -> wfcT (32,NC)
    w1t = jax.random.normal(ks[0], (K, C1), jnp.float32) * 0.3
    b1 = jax.random.normal(ks[1], (1, C1), jnp.float32) * 0.1
    w2t = jax.random.normal(ks[2], (K, C1, C2), jnp.float32) * 0.1
    b2 = jax.random.normal(ks[3], (1, C2), jnp.float32) * 0.1
    wfcT = jax.random.normal(ks[4], (C2, NC), jnp.float32) * 0.2
    bfc = jax.random.normal(ks[5], (1, NC), jnp.float32) * 0.1
    params = (w1t, b1, w2t, b2, wfcT, bfc)

    x = jax.random.normal(ks[6], (B, 1, L), jnp.float32)

    out = jax.block_until_ready(cnn_forward(x, params))
    ref = jax.block_until_ready(ref_forward(x, params))

    assert out.shape == (B, NC)
    assert jnp.allclose(out, ref, atol=1e-3, rtol=1e-3), (out, ref)
    print("KERNEL_OK")
</pallas_src>

<mosaic_0001>
module attributes {stable_mosaic.version = 11 : i64} {
  func.func @cnn_kernel(%arg0: i32, %arg1: memref<32x8xf32, #tpu.memory_space<vmem>>, %arg2: memref<8x16xf32, #tpu.memory_space<vmem>>, %arg3: memref<1x16xf32, #tpu.memory_space<vmem>>, %arg4: memref<48x32xf32, #tpu.memory_space<vmem>>, %arg5: memref<1x32xf32, #tpu.memory_space<vmem>>, %arg6: memref<32x128xf32, #tpu.memory_space<vmem>>, %arg7: memref<1x128xf32, #tpu.memory_space<vmem>>, %arg8: memref<2x128xf32, #tpu.memory_space<vmem>>, %arg9: memref<2x18x16xf32, #tpu.memory_space<vmem>>) attributes {dimension_semantics = [#tpu.dimension_semantics<parallel>], iteration_bounds = array<i64: 1>, scalar_prefetch = 0 : i64, scratch_operands = 1 : i64, tpu.core_type = #tpu.core_type<tc>, window_params = [{transform_indices = @transform_0, window_bounds = array<i64: 32, 8>}, {pipeline_mode = #tpu.pipeline_mode<synchronous>, transform_indices = @transform_1, window_bounds = array<i64: 8, 16>}, {pipeline_mode = #tpu.pipeline_mode<synchronous>, transform_indices = @transform_2, window_bounds = array<i64: 1, 16>}, {pipeline_mode = #tpu.pipeline_mode<synchronous>, transform_indices = @transform_3, window_bounds = array<i64: 48, 32>}, {pipeline_mode = #tpu.pipeline_mode<synchronous>, transform_indices = @transform_4, window_bounds = array<i64: 1, 32>}, {pipeline_mode = #tpu.pipeline_mode<synchronous>, transform_indices = @transform_5, window_bounds = array<i64: 32, 128>}, {pipeline_mode = #tpu.pipeline_mode<synchronous>, transform_indices = @transform_6, window_bounds = array<i64: 1, 128>}, {transform_indices = @transform_7, window_bounds = array<i64: 2, 128>}]} {
    %c0 = arith.constant 0 : index
    %c0_0 = arith.constant 0 : index
    %0 = vector.load %arg1[%c0, %c0_0] : memref<32x8xf32, #tpu.memory_space<vmem>>, vector<32x8xf32>
    %c0_1 = arith.constant 0 : index
    %c0_2 = arith.constant 0 : index
    %1 = vector.load %arg2[%c0_1, %c0_2] : memref<8x16xf32, #tpu.memory_space<vmem>>, vector<8x16xf32>
    %cst = arith.constant dense<0.000000e+00> : vector<32x16xf32>
    %2 = tpu.matmul %0, %1, %cst {dimension_numbers = #tpu.dot_dimension_numbers<[1], [0], [0], [1], [0, 0, 1, 1], [], []>} : vector<32x8xf32>, vector<8x16xf32>, vector<32x16xf32> -> vector<32x16xf32>
    %c0_3 = arith.constant 0 : index
    %c0_4 = arith.constant 0 : index
    %3 = vector.load %arg3[%c0_3, %c0_4] : memref<1x16xf32, #tpu.memory_space<vmem>>, vector<1x16xf32>
    %4 = vector.broadcast %3 : vector<1x16xf32> to vector<32x16xf32>
    %5 = arith.addf %2, %4 : vector<32x16xf32>
    %cst_5 = arith.constant 0.000000e+00 : f32
    %6 = vector.broadcast %cst_5 : f32 to vector<32x16xf32>
    %7 = arith.maximumf %5, %6 : vector<32x16xf32>
    %8 = vector.shape_cast %7 : vector<32x16xf32> to vector<2x16x16xf32>
    %c0_6 = arith.constant 0 : index
    %c1 = arith.constant 1 : index
    %c0_7 = arith.constant 0 : index
    %9 = vector.load %arg9[%c0_6, %c1, %c0_7] : memref<2x18x16xf32, #tpu.memory_space<vmem>>, vector<2x16x16xf32>
    tpu.vector_store %arg9[%c0_6, %c1, %c0_7], %8 {strides = array<i32>} : memref<2x18x16xf32, #tpu.memory_space<vmem>>, vector<2x16x16xf32>,
    %cst_8 = arith.constant 0.000000e+00 : f32
    %10 = vector.broadcast %cst_8 : f32 to vector<2x1x16xf32>
    %c0_9 = arith.constant 0 : index
    %c0_10 = arith.constant 0 : index
    %c0_11 = arith.constant 0 : index
    %11 = vector.load %arg9[%c0_9, %c0_10, %c0_11] : memref<2x18x16xf32, #tpu.memory_space<vmem>>, vector<2x1x16xf32>
    tpu.vector_store %arg9[%c0_9, %c0_10, %c0_11], %10 {strides = array<i32>} : memref<2x18x16xf32, #tpu.memory_space<vmem>>, vector<2x1x16xf32>,
    %cst_12 = arith.constant 0.000000e+00 : f32
    %12 = vector.broadcast %cst_12 : f32 to vector<2x1x16xf32>
    %c0_13 = arith.constant 0 : index
    %c17 = arith.constant 17 : index
    %c0_14 = arith.constant 0 : index
    %13 = vector.load %arg9[%c0_13, %c17, %c0_14] : memref<2x18x16xf32, #tpu.memory_space<vmem>>, vector<2x1x16xf32>
    tpu.vector_store %arg9[%c0_13, %c17, %c0_14], %12 {strides = array<i32>} : memref<2x18x16xf32, #tpu.memory_space<vmem>>, vector<2x1x16xf32>,
    %c0_15 = arith.constant 0 : index
    %c0_16 = arith.constant 0 : index
    %c0_17 = arith.constant 0 : index
    %14 = vector.load %arg9[%c0_15, %c0_16, %c0_17] : memref<2x18x16xf32, #tpu.memory_space<vmem>>, vector<2x18x16xf32>
    %15 = vector.extract_strided_slice %14 {offsets = [0, 0, 0], sizes = [2, 16, 16], strides = [1, 1, 1]} : vector<2x18x16xf32> to vector<2x16x16xf32>
    %16 = vector.extract_strided_slice %14 {offsets = [0, 1, 0], sizes = [2, 16, 16], strides = [1, 1, 1]} : vector<2x18x16xf32> to vector<2x16x16xf32>
    %17 = vector.extract_strided_slice %14 {offsets = [0, 2, 0], sizes = [2, 16, 16], strides = [1, 1, 1]} : vector<2x18x16xf32> to vector<2x16x16xf32>
    %18 = tpu.concatenate %15, %16, %17 in 2 : vector<2x16x16xf32>, vector<2x16x16xf32>, vector<2x16x16xf32> -> vector<2x16x48xf32>
    %19 = vector.shape_cast %18 : vector<2x16x48xf32> to vector<32x48xf32>
    %c0_18 = arith.constant 0 : index
    %c0_19 = arith.constant 0 : index
    %20 = vector.load %arg4[%c0_18, %c0_19] : memref<48x32xf32, #tpu.memory_space<vmem>>, vector<48x32xf32>
    %cst_20 = arith.constant dense<0.000000e+00> : vector<32x32xf32>
    %21 = tpu.matmul %19, %20, %cst_20 {dimension_numbers = #tpu.dot_dimension_numbers<[1], [0], [0], [1], [0, 0, 1, 1], [], []>} : vector<32x48xf32>, vector<48x32xf32>, vector<32x32xf32> -> vector<32x32xf32>
    %c0_21 = arith.constant 0 : index
    %c0_22 = arith.constant 0 : index
    %22 = vector.load %arg5[%c0_21, %c0_22] : memref<1x32xf32, #tpu.memory_space<vmem>>, vector<1x32xf32>
    %23 = vector.broadcast %22 : vector<1x32xf32> to vector<32x32xf32>
    %24 = arith.addf %21, %23 : vector<32x32xf32>
    %cst_23 = arith.constant 0.000000e+00 : f32
    %25 = vector.broadcast %cst_23 : f32 to vector<32x32xf32>
    %26 = arith.maximumf %24, %25 : vector<32x32xf32>
    %27 = vector.shape_cast %26 : vector<32x32xf32> to vector<2x16x32xf32>
    %cst_24 = arith.constant dense<0xFF800000> : vector<2x32xf32>
    %28 = vector.multi_reduction <maximumf>, %27, %cst_24 [1] : vector<2x16x32xf32> to vector<2x32xf32>
    %c0_25 = arith.constant 0 : index
    %c0_26 = arith.constant 0 : index
    %29 = vector.load %arg6[%c0_25, %c0_26] : memref<32x128xf32, #tpu.memory_space<vmem>>, vector<32x128xf32>
    %cst_27 = arith.constant dense<0.000000e+00> : vector<2x128xf32>
    %30 = tpu.matmul %28, %29, %cst_27 {dimension_numbers = #tpu.dot_dimension_numbers<[1], [0], [0], [1], [0, 0, 1, 1], [], []>} : vector<2x32xf32>, vector<32x128xf32>, vector<2x128xf32> -> vector<2x128xf32>
    %c0_28 = arith.constant 0 : index
    %c0_29 = arith.constant 0 : index
    %31 = vector.load %arg7[%c0_28, %c0_29] : memref<1x128xf32, #tpu.memory_space<vmem>>, vector<1x128xf32>
    %32 = vector.broadcast %31 : vector<1x128xf32> to vector<2x128xf32>
    %33 = arith.addf %30, %32 : vector<2x128xf32>
    %c0_30 = arith.constant 0 : index
    %c0_31 = arith.constant 0 : index
    %34 = vector.load %arg8[%c0_30, %c0_31] : memref<2x128xf32, #tpu.memory_space<vmem>>, vector<2x128xf32>
    tpu.vector_store %arg8[%c0_30, %c0_31], %33 {strides = array<i32>} : memref<2x128xf32, #tpu.memory_space<vmem>>, vector<2x128xf32>,
    return
  }
  func.func @transform_0(%arg0: i32) -> (i32, i32) {
    %c0_i32 = arith.constant 0 : i32
    %c0_i32_0 = arith.constant 0 : i32
    return %arg0, %c0_i32 : i32, i32
  }
  func.func @transform_1(%arg0: i32) -> (i32, i32) {
    %c0_i32 = arith.constant 0 : i32
    %c0_i32_0 = arith.constant 0 : i32
    %c0_i32_1 = arith.constant 0 : i32
    return %c0_i32, %c0_i32_0 : i32, i32
  }
  func.func @transform_2(%arg0: i32) -> (i32, i32) {
    %c0_i32 = arith.constant 0 : i32
    %c0_i32_0 = arith.constant 0 : i32
    %c0_i32_1 = arith.constant 0 : i32
    return %c0_i32, %c0_i32_0 : i32, i32
  }
  func.func @transform_3(%arg0: i32) -> (i32, i32) {
    %c0_i32 = arith.constant 0 : i32
    %c0_i32_0 = arith.constant 0 : i32
    %c0_i32_1 = arith.constant 0 : i32
    return %c0_i32, %c0_i32_0 : i32, i32
  }
  func.func @transform_4(%arg0: i32) -> (i32, i32) {
    %c0_i32 = arith.constant 0 : i32
    %c0_i32_0 = arith.constant 0 : i32
    %c0_i32_1 = arith.constant 0 : i32
    return %c0_i32, %c0_i32_0 : i32, i32
  }
  func.func @transform_5(%arg0: i32) -> (i32, i32) {
    %c0_i32 = arith.constant 0 : i32
    %c0_i32_0 = arith.constant 0 : i32
    %c0_i32_1 = arith.constant 0 : i32
    return %c0_i32, %c0_i32_0 : i32, i32
  }
  func.func @transform_6(%arg0: i32) -> (i32, i32) {
    %c0_i32 = arith.constant 0 : i32
    %c0_i32_0 = arith.constant 0 : i32
    %c0_i32_1 = arith.constant 0 : i32
    return %c0_i32, %c0_i32_0 : i32, i32
  }
  func.func @transform_7(%arg0: i32) -> (i32, i32) {
    %c0_i32 = arith.constant 0 : i32
    %c0_i32_0 = arith.constant 0 : i32
    return %arg0, %c0_i32 : i32, i32
  }
}

</mosaic_0001>

<bundles_post_ra>
// kernel: tpu_custom_call.1
= control target key start
LH: loop header
LB: loop body
LE: loop exit
PB: predicated region body
PF: predicated region fallthrough
CT: control target
= control target key end

     0   :  { %vm39_vm0 = vcmask 64512   ;;  %s689_s0 = inlined_call_operand.vmem [shape: f32[32,8], index: 0, kind: input, shape index: {}]   ;;  %s690_s1 = inlined_call_operand.vmem [shape: f32[8,16], index: 1, kind: input, shape index: {}]   ;;  %s691_s2 = inlined_call_operand.vmem [shape: f32[1,16], index: 2, kind: input, shape index: {}]   ;;  %s692_s3 = inlined_call_operand.vmem [shape: f32[48,32], index: 3, kind: input, shape index: {}]   ;;  %s693_s4 = inlined_call_operand.vmem [shape: f32[1,32], index: 4, kind: input, shape index: {}]   ;;  %s694_s5 = inlined_call_operand.vmem [shape: f32[32,128], index: 5, kind: input, shape index: {}]   ;;  %s695_s6 = inlined_call_operand.vmem [shape: f32[1,128], index: 6, kind: input, shape index: {}]   ;;  %s696_s7 = inlined_call_operand.hbm [shape: f32[2,128], index: 7, kind: output, shape index: {}]  }
   0x1   :  { %v31_v0 = vld [vmem:[%s690_s1] sm:$0xff]  ;;  %v28_v2 = vld [vmem:[%s689_s0 + $0x8] sm:$0xff]  ;;  %v29_v3 = vld [vmem:[%s689_s0 + $0x10] sm:$0xff] }
   0x2   :  { %v27_v1 = vld [vmem:[%s689_s0] sm:$0xff]  ;;  %485 = vmatprep.subr.mxu0 %v31_v0 }
   0x3   :  { %487 = vmatprep.mubr.msk.f32.mxu0 %vm39_vm0, %v27_v1 }
   0x4   :  { %12 = vsyncpa [#allocation4], 0  ;;  %486 = vmatpush3.msra.mxu0 %v31_v0  ;;  %v30_v4 = vld [vmem:[%s689_s0 + $0x18] sm:$0xff]  ;;  %vm146_vm1 = vcmask 122880   ;;  %v549_v5 = vmov 0.0   ;;  %v223_v6 = vld [vmem:[%s692_s3 + $0x28] sm:$0xff] }
   0x5   :  { %488 = vmatmul.mubr.msk.f32.vlgmr.msra.gmra.mxu0 %vm39_vm0, %v28_v2  ;;  %147 = vst.msk [vmem:[#allocation2] sm:$0x1] %vm146_vm1, %v549_v5  ;;  %148 = vst.msk [vmem:[#allocation2 + $0x18] sm:$0x1] %vm146_vm1, %v549_v5  ;;  %511 = vmatprep.subr.mxu0 %v549_v5  ;;  %v222_v7 = vld [vmem:[%s692_s3 + $0x20] sm:$0xff]  ;;  %v221_v8 = vld [vmem:[%s692_s3 + $0x18] sm:$0xff] }
   0x6   :  { %490 = vmatprep.mubr.msk.f32.mxu0 %vm39_vm0, %v29_v3  ;;  %149 = vst.msk [vmem:[#allocation2 + $0x11] sm:$0x1] %vm146_vm1, %v549_v5  ;;  %150 = vst.msk [vmem:[#allocation2 + $0x29] sm:$0x1] %vm146_vm1, %v549_v5  ;;  %493 = vmatprep.subr.mxu1 %v223_v6  ;;  %v453_v9 = vld [vmem:[%s691_s2] ss:$0 sm:$0xff] }
   0x7   :  { %494 = vmatpush3.msra.mxu1 %v223_v6  ;;  %vm141_vm2 = vcmask 130048   ;;  %v220_v16 = vld [vmem:[%s692_s3 + $0x10] sm:$0xff]  ;;  %v219_v19 = vld [vmem:[%s692_s3 + $0x8] sm:$0xff]  ;;  %v218_v23 = vld [vmem:[%s692_s3] sm:$0xff]  ;;  %vm186_vm3 = vcmask 1045504   ;;  %vm163_vm4 = vcmask 1046528  }
   0x8   :  { %495 = vmatprep.subr.mxu1 %v222_v7  ;;  %s550_s3 = smov 32   ;;  %s551_s22 = smov 16   ;;  %vm213_vm5 = vcmask 261120   ;;  %vm231_vm6 = vcmask 392192   ;;  %v354_v3 = vld [vmem:[%s694_s5 + $0x18] sm:$0xff]  ;;  %v352_v6 = vld [vmem:[%s694_s5 + $0x8] sm:$0xff] }
   0x9   :  { %491 = vmatmul.mubr.msk.f32.gmra.mxu0 %vm39_vm0, %v30_v4  ;;  %496 = vmatpush3.msra.mxu1 %v222_v7  ;;  %v353_v4 = vld [vmem:[%s694_s5 + $0x10] sm:$0xff]  ;;  %v351_v7 = vld [vmem:[%s694_s5] sm:$0xff]  ;;  %vm552_vm7 = vmmov 0   ;;  %vm364_vm8 = vcmask 1041409   ;;  %s553_s9 = smov [#allocation3]  }
   0xa   :  { %497 = vmatprep.subr.mxu1 %v221_v8  ;;  %512 = vmatpush3.msra.mxu0 %v354_v3  ;;  %s445_s10 = sshll.u32 %s553_s9, 4  ;;  %s446_s10 = int_to_ptr.vmem [resolvable:$true] %s445_s10 }
   0xb   :  { %498 = vmatpush3.msra.mxu1 %v221_v8  ;;  %513 = vmatprep.subr.mxu0 %v549_v5  ;;  %v458_v8 = vld [vmem:[%s693_s4] ss:$0 sm:$0xff]  ;;  %s527_s11 = scalar_lea.vmem %s446_s10, 32  ;;  %p532_p1 = scmp.lt.s32.totalorder %s446_s10, %s446_s10 }
   0xc   :  { %499 = vmatprep.subr.mxu1 %v220_v16  ;;  %514 = vmatpush3.msra.mxu0 %v353_v4  ;;  %p528_p0 = scmp.ne.s32.totalorder %s446_s10, %s527_s11  ;;  %p533_p2 = scmp.lt.s32.totalorder %s527_s11, %s527_s11 }
   0xd   :  { %500 = vmatpush3.msra.mxu1 %v220_v16  ;;  %515 = vmatprep.subr.mxu0 %v549_v5 }
   0xe   :  { %501 = vmatprep.subr.mxu1 %v219_v19  ;;  %516 = vmatpush3.msra.mxu0 %v352_v6  ;;  %p534_p3 = por %p533_p2, %p532_p1 }
   0xf   :  { %502 = vmatpush3.msra.mxu1 %v219_v19  ;;  %517 = vmatprep.subr.mxu0 %v549_v5 }
  0x10   :  { %503 = vmatprep.subr.mxu1 %v218_v23  ;;  %519 = vmatprep.mubr.msk.f32.mxu0 %vm552_vm7, %v549_v5  ;;  %p535_p4 = pnand %p534_p3, %p528_p0 }
  0x11   :  { %504 = vmatpush3.msra.mxu1 %v218_v23  ;;  %518 = vmatpush3.msra.mxu0 %v351_v7 }
  0xc5   :  { %v489_v10 = vpop.f32.mrf.mxu0 }
  0xc6   :  { %v124_v11 = vadd.f32 %v489_v10, %v453_v9 }
  0xc7   :  { %v118_v12 = vpop.f32.mrf.mxu0 }
  0xc8   :  { %v138_v13 = vmax.f32 %v124_v11, 0.0  ;;  %v119_v14 = vadd.f32 %v453_v9, %v118_v12 }
  0xc9   :  { %v492_v15 = vpop.f32.mrf.mxu0 }
  0xca   :  { %143 = vst.msk [vmem:[#allocation2 + $0x9] sm:$0xff] %vm141_vm2, %v138_v13  ;;  %v137_v17 = vmax.f32 %v119_v14, 0.0  ;;  %v134_v18 = vadd.f32 %v492_v15, %v453_v9 }
  0xcb   :  { %v128_v20 = vpop.f32.mrf.mxu0 }
  0xcc   :  { %142 = vst.msk [vmem:[#allocation2 + $0x1] sm:$0xff] %vm141_vm2, %v137_v17  ;;  %v140_v21 = vmax.f32 %v134_v18, 0.0  ;;  %v129_v22 = vadd.f32 %v453_v9, %v128_v20 }
  0xce   :  { %145 = vst.msk [vmem:[#allocation2 + $0x21] sm:$0xff] %vm141_vm2, %v140_v21  ;;  %v139_v24 = vmax.f32 %v129_v22, 0.0 }
  0xd0   :  { %144 = vst.msk [vmem:[#allocation2 + $0x19] sm:$0xff] %vm141_vm2, %v139_v24 }
  0xd1   :  { %v153_v31 = vld [vmem:[#allocation2 + $0x10] sm:$0x3] }
  0xd2   :  { %v190_v34 = vrot.slane %v153_v31, 2  ;;  %v167_v38 = vrot.slane %v153_v31, 1 }
  0xd3   :  { %v151_v25 = vld [vmem:[#allocation2] sm:$0xff]  ;;  %v152_v26 = vld [vmem:[#allocation2 + $0x8] sm:$0xff] }
  0xd4   :  { %v187_v27 = vrot.slane %v151_v25, 2  ;;  %v188_v28 = vrot.slane %v152_v26, 2  ;;  %v164_v29 = vrot.slane %v151_v25, 1  ;;  %v165_v30 = vrot.slane %v152_v26, 1 }
  0xd5   :  { %v156_v36 = vld [vmem:[#allocation2 + $0x28] sm:$0x3] }
  0xd6   :  { %v189_v32 = vsel %vm186_vm3, %v187_v27, %v188_v28  ;;  %v166_v33 = vsel %vm163_vm4, %v164_v29, %v165_v30  ;;  %v191_v39 = vsel %vm186_vm3, %v188_v28, %v190_v34  ;;  %v168_v40 = vsel %vm163_vm4, %v165_v30, %v167_v38 }
  0xd7   :  { %197 = vrot.lane.b32.xlu1 %v189_v32, %s550_s3  ;;  %174 = vrot.lane.b32.xlu0 %v166_v33, %s551_s22  ;;  %v155_v35 = vld [vmem:[#allocation2 + $0x20] sm:$0xff]  ;;  %v154_v37 = vld [vmem:[#allocation2 + $0x18] sm:$0xff]  ;;  %v172_v42 = vrot.slane %v156_v36, 1  ;;  %v195_v44 = vrot.slane %v156_v36, 2 }
  0xd8   :  { %v170_v41 = vrot.slane %v155_v35, 1  ;;  %v169_v43 = vrot.slane %v154_v37, 1  ;;  %v193_v47 = vrot.slane %v155_v35, 2  ;;  %v192_v48 = vrot.slane %v154_v37, 2 }
  0xda   :  { %v173_v45 = vsel %vm163_vm4, %v170_v41, %v172_v42  ;;  %v171_v46 = vsel %vm163_vm4, %v169_v43, %v170_v41  ;;  %v196_v49 = vsel %vm186_vm3, %v193_v47, %v195_v44  ;;  %v194_v50 = vsel %vm186_vm3, %v192_v48, %v193_v47 }
  0xdb   :  { %199 = vrot.lane.b32.xlu1 %v191_v39, %s550_s3  ;;  %176 = vrot.lane.b32.xlu0 %v168_v40, %s551_s22  ;;  %v463_v39 = vld [vmem:[%s695_s6] ss:$0 sm:$0xff] }
  0xdf   :  { %180 = vrot.lane.b32.xlu1 %v173_v45, %s551_s22  ;;  %178 = vrot.lane.b32.xlu0 %v171_v46, %s551_s22 }
  0xe3   :  { %203 = vrot.lane.b32.xlu1 %v196_v49, %s550_s3  ;;  %201 = vrot.lane.b32.xlu0 %v194_v50, %s550_s3 }
 0x149   :  { %v198_v51 = vpop.permute.xlu1 %197  ;;  %v175_v52 = vpop.permute.xlu0 %174 }
 0x14a   :  { %v209_v53 = vsel %vm141_vm2, %v151_v25, %v175_v52 }
 0x14b   :  { %v214_v54 = vsel %vm213_vm5, %v209_v53, %v198_v51 }
 0x14c   :  { %505 = vmatprep.mubr.msk.f32.mxu1 %vm231_vm6, %v214_v54 }
 0x14d   :  { %v200_v55 = vpop.permute.xlu1 %199  ;;  %v177_v56 = vpop.permute.xlu0 %176 }
 0x14e   :  { %v210_v57 = vsel %vm141_vm2, %v152_v26, %v177_v56 }
 0x14f   :  { %v215_v58 = vsel %vm213_vm5, %v210_v57, %v200_v55 }
 0x150   :  { %506 = vmatmul.mubr.msk.f32.vlgmr.msra.gmra.mxu1 %vm231_vm6, %v215_v58 }
 0x151   :  { %v181_v59 = vpop.permute.xlu1 %180  ;;  %v179_v60 = vpop.permute.xlu0 %178 }
 0x152   :  { %v212_v61 = vsel %vm141_vm2, %v155_v35, %v181_v59  ;;  %v211_v62 = vsel %vm141_vm2, %v154_v37, %v179_v60 }
 0x155   :  { %v204_v63 = vpop.permute.xlu1 %203  ;;  %v202_v0 = vpop.permute.xlu0 %201 }
 0x156   :  { %v217_v1 = vsel %vm213_vm5, %v212_v61, %v204_v63  ;;  %v216_v2 = vsel %vm213_vm5, %v211_v62, %v202_v0 }
 0x157   :  { %508 = vmatprep.mubr.msk.f32.mxu1 %vm231_vm6, %v216_v2 }
 0x158   :  { %509 = vmatmul.mubr.msk.f32.gmra.mxu1 %vm231_vm6, %v217_v1 }
 0x210   :  { %v507_v9 = vpop.f32.mrf.mxu1 }
 0x211   :  { %v316_v10 = vadd.f32 %v507_v9, %v458_v8 }
 0x212   :  { %v310_v11 = vpop.f32.mrf.mxu1 }
 0x213   :  { %v330_v12 = vmax.f32 %v316_v10, 0.0  ;;  %v311_v13 = vadd.f32 %v458_v8, %v310_v11 }
 0x215   :  { %v329_v14 = vmax.f32 %v311_v13, 0.0  ;;  %v334_v15 = vsel %vm213_vm5, %v330_v12, -inf }
 0x217   :  { %v333_v16 = vsel %vm213_vm5, %v329_v14, -inf }
 0x218   :  { %v335_v17 = vmax.f32 %v333_v16, %v334_v15  ;;  %v510_v18 = vpop.f32.mrf.mxu1 }
 0x219   :  { %v326_v19 = vadd.f32 %v510_v18, %v458_v8 }
 0x21a   :  { %v336_v20 = vrot.slane %v335_v17, 4  ;;  %v320_v5 = vpop.f32.mrf.mxu1 }
 0x21b   :  { %v332_v21 = vmax.f32 %v326_v19, 0.0  ;;  %v321_v22 = vadd.f32 %v458_v8, %v320_v5 }
 0x21c   :  { %v337_v23 = vmax.f32 %v335_v17, %v336_v20 }
 0x21d   :  { %v331_v24 = vmax.f32 %v321_v22, 0.0  ;;  %v343_v25 = vsel %vm213_vm5, %v332_v21, -inf }
 0x21e   :  { %v338_v27 = vrot.slane %v337_v23, 2 }
 0x21f   :  { %v342_v26 = vsel %vm213_vm5, %v331_v24, -inf }
 0x220   :  { %v344_v28 = vmax.f32 %v342_v26, %v343_v25  ;;  %v339_v30 = vmax.f32 %v337_v23, %v338_v27 }
 0x222   :  { %v345_v29 = vrot.slane %v344_v28, 4  ;;  %v340_v33 = vrot.slane %v339_v30, 1 }
 0x224   :  { %v346_v31 = vmax.f32 %v344_v28, %v345_v29  ;;  %v341_v36 = vmax.f32 %v339_v30, %v340_v33 }
 0x226   :  { %v347_v32 = vrot.slane %v346_v31, 2 }
 0x228   :  { %v348_v34 = vmax.f32 %v346_v31, %v347_v32 }
 0x22a   :  { %v349_v35 = vrot.slane %v348_v34, 1 }
 0x22c   :  { %v350_v37 = vmax.f32 %v348_v34, %v349_v35 }
 0x22e   :  { %v365_v38 = vsel %vm364_vm8, %v350_v37, %v341_v36 }
 0x22f   :  { %520 = vmatmul.mubr.msk.f32.vlgmr.msra.gmra.mxu0 %vm213_vm5, %v365_v38 }
 0x2ef   :  { %v434_v40 = vpop.f32.mrf.mxu0 }
 0x2f0   :  { %v435_v41 = vadd.f32 %v463_v39, %v434_v40 }
 0x2f1   :  { %v521_v42 = vpop.f32.mrf.mxu0 }
 0x2f2   :  { %438 = vst [vmem:[#allocation3] sm:$0x3] %v435_v41 }
 0x2f3   :  { %538 = shalt.err (!%p535_p4)
}
 0x2f4   :  { %448 = dma.vmem_to_hbm [thread:$0]  %s446_s10, 32, %s696_s7, [#allocation4]  }
 0x2f5   :  { %547 = dma.done.wait [#allocation4], 32  }
 0x2f6   :  { %548 = vsyncadd [#allocation4], 4294967264 }
 0x2f7   :  { %452 = vsyncpa [#allocation4], 1 }

</bundles_post_ra>
